<compile_context>
chip_gen: v6e
topology: v6e:2x2x1
jax: 0.10.0
libtpu: 0.0.40
codegen_flags: <defaults>
</compile_context>

<pallas_src>
import functools

import jax
import jax.numpy as jnp
from jax import lax
from jax.experimental import pallas as pl
from jax.experimental.pallas import tpu as pltpu


# ------------------------------------------------ Kernel 1: LayerNorm + QKV projection
def _ln_qkv_kernel(x_ref, g_ref, b_ref, w_ref, q_ref, k_ref, v_ref, *,
                   heads, dim_head):
    inner = heads * dim_head
    x = x_ref[...].astype(jnp.float32)                        # [tm, D]
    mean = jnp.mean(x, axis=-1, keepdims=True)
    var = jnp.mean((x - mean) ** 2, axis=-1, keepdims=True)
    xn = (x - mean) * lax.rsqrt(var + 1e-5)
    xn = xn * g_ref[...].astype(jnp.float32) + b_ref[...].astype(jnp.float32)

    # bf16 operands into the MXU, f32 accumulate (w_ref is already bf16).
    qkv = jnp.dot(xn.astype(jnp.bfloat16), w_ref[...],
                  preferred_element_type=jnp.float32)          # [tm, 3*inner] f32

    # One-time split into head-major planes so kernel 2's head slicing is pure
    # BlockSpec/DMA indexing (no in-register lane relayouts there).
    for h in range(heads):
        lo = h * dim_head
        q_ref[h] = qkv[:, lo:lo + dim_head].astype(q_ref.dtype)
        k_ref[h] = qkv[:, inner + lo:inner + lo + dim_head].astype(k_ref.dtype)
        v_ref[h] = qkv[:, 2 * inner + lo:2 * inner + lo + dim_head].astype(v_ref.dtype)


def fused_ln_qkv_proj(x2d, ln_gamma, ln_beta, w_qkv_bf16, *, heads, dim_head, tm=512):
    M, D = x2d.shape
    NO = w_qkv_bf16.shape[1]
    tm = min(tm, M)
    if M % tm != 0 or tm % 8 != 0:        # keep (8,128) rule; demo-scale fallback
        tm = M
    grid = (pl.cdiv(M, tm),)
    kernel = functools.partial(_ln_qkv_kernel, heads=heads, dim_head=dim_head)
    out_shape = tuple(jax.ShapeDtypeStruct((heads, M, dim_head), x2d.dtype)
                      for _ in range(3))
    out_spec = pl.BlockSpec((heads, tm, dim_head), lambda i: (0, i, 0))
    return pl.pallas_call(
        kernel,
        out_shape=out_shape,
        grid=grid,
        in_specs=[pl.BlockSpec((tm, D), lambda i: (i, 0)),
                  pl.BlockSpec((1, D), lambda i: (0, 0)),
                  pl.BlockSpec((1, D), lambda i: (0, 0)),
                  pl.BlockSpec((D, NO), lambda i: (0, 0))],   # resident bf16 weight
        out_specs=[out_spec, out_spec, out_spec],
        compiler_params=pltpu.CompilerParams(
            dimension_semantics=("parallel",),
            vmem_limit_bytes=64 * 1024 * 1024),
    )(x2d, ln_gamma, ln_beta, w_qkv_bf16)


# ------------- Kernel 2: per-head RMSNorm + flash attention + output projection
def _flash_attn_kernel(q_ref, k_ref, v_ref, gq_ref, gk_ref, wo_ref, o_ref,
                       m_sc, l_sc, acc_sc, out_sc):
    h = pl.program_id(2)
    j = pl.program_id(3)
    nh = pl.num_programs(2)
    nj = pl.num_programs(3)

    @pl.when(jnp.logical_and(h == 0, j == 0))
    def _():
        out_sc[...] = jnp.zeros_like(out_sc)

    @pl.when(j == 0)
    def _():
        m_sc[...] = jnp.full_like(m_sc, -jnp.inf)
        l_sc[...] = jnp.zeros_like(l_sc)
        acc_sc[...] = jnp.zeros_like(acc_sc)

    eps2 = jnp.float32(1e-24)             # F.normalize: x / max(||x||, 1e-12)
    qh = q_ref[0, 0].astype(jnp.float32)                       # [tq, dh]
    kh = k_ref[0, 0].astype(jnp.float32)                       # [tkv, dh]
    gq = gq_ref[0].astype(jnp.float32)                         # [1, dh], pre-scaled sqrt(dh)
    gk = gk_ref[0].astype(jnp.float32)

    qn = qh * lax.rsqrt(jnp.maximum(jnp.sum(qh * qh, -1, keepdims=True), eps2)) * gq
    kn = kh * lax.rsqrt(jnp.maximum(jnp.sum(kh * kh, -1, keepdims=True), eps2)) * gk

    # QK^T: bf16 MXU operands, f32 accumulate, no materialized K transpose.
    s = lax.dot_general(qn.astype(jnp.bfloat16), kn.astype(jnp.bfloat16),
                        (((1,), (1,)), ((), ())),
                        preferred_element_type=jnp.float32)    # [tq, tkv]

    # Online (flash) softmax update in f32.
    m_prev = m_sc[...]
    m_new = jnp.maximum(m_prev, jnp.max(s, axis=-1, keepdims=True))
    alpha = jnp.exp(m_prev - m_new)
    p = jnp.exp(s - m_new)
    l_sc[...] = alpha * l_sc[...] + jnp.sum(p, axis=-1, keepdims=True)
    acc_sc[...] = alpha * acc_sc[...] + jnp.dot(
        p.astype(jnp.bfloat16), v_ref[0, 0].astype(jnp.bfloat16),
        preferred_element_type=jnp.float32)
    m_sc[...] = m_new

    # End of the KV loop for this head: normalize and fold this head's slice of
    # the output projection into the (tq, D) accumulator (no head concat).
    @pl.when(j == nj - 1)
    def _():
        inv_l = pl.reciprocal(l_sc[...], approx=True)
        out_sc[...] += jnp.dot((acc_sc[...] * inv_l).astype(jnp.bfloat16),
                               wo_ref[...],               # bf16 [dh, D] head slab
                               preferred_element_type=jnp.float32)

    @pl.when(jnp.logical_and(h == nh - 1, j == nj - 1))
    def _():
        o_ref[0] = out_sc[...].astype(o_ref.dtype)


def flash_attention_out_proj(q, k, v, gq, gk, w_out_bf16, *, out_dim,
                             tq=128, tkv=128):
    H, B, N, dh = q.shape
    D = out_dim
    tq = min(tq, N)
    tkv = min(tkv, N)
    if N % tq != 0 or tq % 8 != 0:
        tq = N
    if N % tkv != 0 or tkv % 8 != 0:
        tkv = N
    grid = (B, N // tq, H, N // tkv)
    return pl.pallas_call(
        _flash_attn_kernel,
        out_shape=jax.ShapeDtypeStruct((B, N, D), q.dtype),
        grid=grid,
        in_specs=[
            pl.BlockSpec((1, 1, tq, dh), lambda b, i, h, j: (h, b, i, 0)),   # q tile
            pl.BlockSpec((1, 1, tkv, dh), lambda b, i, h, j: (h, b, j, 0)),  # k tile
            pl.BlockSpec((1, 1, tkv, dh), lambda b, i, h, j: (h, b, j, 0)),  # v tile
            pl.BlockSpec((1, 1, dh), lambda b, i, h, j: (h, 0, 0)),          # gamma_q[h]
            pl.BlockSpec((1, 1, dh), lambda b, i, h, j: (h, 0, 0)),          # gamma_k[h]
            pl.BlockSpec((dh, D), lambda b, i, h, j: (h, 0)),                # Wout rows of head h
        ],
        out_specs=pl.BlockSpec((1, tq, D), lambda b, i, h, j: (b, i, 0)),
        scratch_shapes=[
            pltpu.VMEM((tq, 1), jnp.float32),    # m (online-softmax max)
            pltpu.VMEM((tq, 1), jnp.float32),    # l (online-softmax denom)
            pltpu.VMEM((tq, dh), jnp.float32),   # per-head attn @ V accumulator
            pltpu.VMEM((tq, D), jnp.float32),    # output-projection accumulator
        ],
        compiler_params=pltpu.CompilerParams(
            dimension_semantics=("parallel", "parallel", "arbitrary", "arbitrary"),
            vmem_limit_bytes=64 * 1024 * 1024),
    )(q, k, v, gq, gk, w_out_bf16)


# ---------------------------------------------------------------- Full forward
def attention_forward(x, params, *, heads, dim_head):
    B, N, D = x.shape

    # One-time (jit-hoisted) prep: fuse Wq|Wkv into a single bf16 [D, 3*inner]
    # weight, cast Wout to bf16, and fold sqrt(dh) into the RMSNorm gammas.
    w_qkv = jnp.concatenate([params["w_q"], params["w_kv"]], axis=1).astype(jnp.bfloat16)
    w_out = params["w_out"].astype(jnp.bfloat16)
    scale = jnp.float32(dim_head) ** 0.5
    gq = params["gamma_q"] * scale                 # [H, 1, dh] f32
    gk = params["gamma_k"] * scale

    q, k, v = fused_ln_qkv_proj(x.reshape(B * N, D),
                                params["ln_gamma"].reshape(1, D),
                                params["ln_beta"].reshape(1, D),
                                w_qkv, heads=heads, dim_head=dim_head)
    # [H, B*N, dh] -> [H, B, N, dh] is a free row-major reshape.
    q = q.reshape(heads, B, N, dim_head)
    k = k.reshape(heads, B, N, dim_head)
    v = v.reshape(heads, B, N, dim_head)

    return flash_attention_out_proj(q, k, v, gq, gk, w_out, out_dim=D)   # [B, N, D]


# ---------------------------------------------------------------- Reference (pure jnp)
def attention_reference(x, params, heads, dim_head):
    B, N, D = x.shape
    inner = heads * dim_head
    mean = jnp.mean(x, axis=-1, keepdims=True)
    var = jnp.mean((x - mean) ** 2, axis=-1, keepdims=True)
    xn = (x - mean) / jnp.sqrt(var + 1e-5) * params["ln_gamma"] + params["ln_beta"]
    q = xn @ params["w_q"]
    kv = xn @ params["w_kv"]
    k, v = kv[..., :inner], kv[..., inner:]

    def to_heads(t):
        return t.reshape(B, N, heads, dim_head).transpose(0, 2, 1, 3)

    qh, kh, vh = to_heads(q), to_heads(k), to_heads(v)

    def rms(t, g):
        n = t / jnp.maximum(jnp.linalg.norm(t, axis=-1, keepdims=True), 1e-12)
        return n * (dim_head ** 0.5) * g

    qh, kh = rms(qh, params["gamma_q"]), rms(kh, params["gamma_k"])
    dots = jnp.einsum("bhqd,bhkd->bhqk", qh, kh)
    attn = jax.nn.softmax(dots, axis=-1)
    o = jnp.einsum("bhqk,bhkd->bhqd", attn, vh)
    o = o.transpose(0, 2, 1, 3).reshape(B, N, inner)
    return o @ params["w_out"]


# ---------------------------------------------------------------- Setup / run
def make_params(key, dim, heads, dim_head):
    inner = heads * dim_head
    k1, k2, k3 = jax.random.split(key, 3)
    return {
        "ln_gamma": jnp.ones((dim,), jnp.float32),
        "ln_beta": jnp.zeros((dim,), jnp.float32),
        "gamma_q": jnp.ones((heads, 1, dim_head), jnp.float32),
        "gamma_k": jnp.ones((heads, 1, dim_head), jnp.float32),
        # nn.Linear(dim, out, bias=False) weights stored as [in, out]
        "w_q": 0.05 * jax.random.normal(k1, (dim, inner), jnp.float32),
        "w_kv": 0.05 * jax.random.normal(k2, (dim, 2 * inner), jnp.float32),
        "w_out": 0.05 * jax.random.normal(k3, (inner, dim), jnp.float32),
    }


if __name__ == "__main__":
    B, N, dim, heads, dim_head = 2, 8, 32, 4, 16

    key = jax.random.PRNGKey(0)
    kx, kp = jax.random.split(key)
    x = jax.random.normal(kx, (B, N, dim), jnp.float32)
    params = make_params(kp, dim, heads, dim_head)

    fwd = jax.jit(functools.partial(attention_forward, heads=heads, dim_head=dim_head))
    out = jax.block_until_ready(fwd(x, params))
    assert out.shape == (B, N, dim) and out.dtype == jnp.float32

    ref = attention_reference(x, params, heads, dim_head)
    max_err = float(jnp.max(jnp.abs(out - ref)))
    # bf16 MXU operands (f32 accumulate / f32 softmax stats) -> slightly looser
    # tolerance than a pure-f32 pipeline.
    assert jnp.allclose(out, ref, atol=2e-2, rtol=2e-2), max_err
    print("KERNEL_OK")
</pallas_src>

<mosaic_0001>
module attributes {stable_mosaic.version = 11 : i64} {
  func.func @_ln_qkv_kernel(%arg0: i32, %arg1: memref<16x32xf32, #tpu.memory_space<vmem>>, %arg2: memref<1x32xf32, #tpu.memory_space<vmem>>, %arg3: memref<1x32xf32, #tpu.memory_space<vmem>>, %arg4: memref<32x192xbf16, #tpu.memory_space<vmem>>, %arg5: memref<4x16x16xf32, #tpu.memory_space<vmem>>, %arg6: memref<4x16x16xf32, #tpu.memory_space<vmem>>, %arg7: memref<4x16x16xf32, #tpu.memory_space<vmem>>) attributes {dimension_semantics = [#tpu.dimension_semantics<parallel>], iteration_bounds = array<i64: 1>, scalar_prefetch = 0 : i64, scratch_operands = 0 : i64, tpu.core_type = #tpu.core_type<tc>, window_params = [{transform_indices = @transform_0, window_bounds = array<i64: 16, 32>}, {pipeline_mode = #tpu.pipeline_mode<synchronous>, transform_indices = @transform_1, window_bounds = array<i64: 1, 32>}, {pipeline_mode = #tpu.pipeline_mode<synchronous>, transform_indices = @transform_2, window_bounds = array<i64: 1, 32>}, {pipeline_mode = #tpu.pipeline_mode<synchronous>, transform_indices = @transform_3, window_bounds = array<i64: 32, 192>}, {transform_indices = @transform_4, window_bounds = array<i64: 4, 16, 16>}, {transform_indices = @transform_5, window_bounds = array<i64: 4, 16, 16>}, {transform_indices = @transform_6, window_bounds = array<i64: 4, 16, 16>}]} {
    %c0 = arith.constant 0 : index
    %c0_0 = arith.constant 0 : index
    %0 = vector.load %arg1[%c0, %c0_0] : memref<16x32xf32, #tpu.memory_space<vmem>>, vector<16x32xf32>
    %cst = arith.constant dense<0.000000e+00> : vector<16xf32>
    %1 = vector.multi_reduction <add>, %0, %cst [1] : vector<16x32xf32> to vector<16xf32>
    %2 = vector.shape_cast %1 : vector<16xf32> to vector<16x1xf32>
    %cst_1 = arith.constant 3.200000e+01 : f32
    %3 = vector.broadcast %cst_1 : f32 to vector<16x1xf32>
    %4 = arith.divf %2, %3 : vector<16x1xf32>
    %5 = vector.broadcast %4 : vector<16x1xf32> to vector<16x32xf32>
    %6 = arith.subf %0, %5 : vector<16x32xf32>
    %7 = arith.mulf %6, %6 : vector<16x32xf32>
    %cst_2 = arith.constant dense<0.000000e+00> : vector<16xf32>
    %8 = vector.multi_reduction <add>, %7, %cst_2 [1] : vector<16x32xf32> to vector<16xf32>
    %9 = vector.shape_cast %8 : vector<16xf32> to vector<16x1xf32>
    %cst_3 = arith.constant 3.200000e+01 : f32
    %10 = vector.broadcast %cst_3 : f32 to vector<16x1xf32>
    %11 = arith.divf %9, %10 : vector<16x1xf32>
    %12 = vector.broadcast %4 : vector<16x1xf32> to vector<16x32xf32>
    %13 = arith.subf %0, %12 : vector<16x32xf32>
    %cst_4 = arith.constant 9.99999974E-6 : f32
    %14 = vector.broadcast %cst_4 : f32 to vector<16x1xf32>
    %15 = arith.addf %11, %14 : vector<16x1xf32>
    %16 = math.rsqrt %15 : vector<16x1xf32>
    %17 = vector.broadcast %16 : vector<16x1xf32> to vector<16x32xf32>
    %18 = arith.mulf %13, %17 : vector<16x32xf32>
    %c0_5 = arith.constant 0 : index
    %c0_6 = arith.constant 0 : index
    %19 = vector.load %arg2[%c0_5, %c0_6] : memref<1x32xf32, #tpu.memory_space<vmem>>, vector<1x32xf32>
    %20 = vector.broadcast %19 : vector<1x32xf32> to vector<16x32xf32>
    %21 = arith.mulf %18, %20 : vector<16x32xf32>
    %c0_7 = arith.constant 0 : index
    %c0_8 = arith.constant 0 : index
    %22 = vector.load %arg3[%c0_7, %c0_8] : memref<1x32xf32, #tpu.memory_space<vmem>>, vector<1x32xf32>
    %23 = vector.broadcast %22 : vector<1x32xf32> to vector<16x32xf32>
    %24 = arith.addf %21, %23 : vector<16x32xf32>
    %25 = arith.truncf %24 : vector<16x32xf32> to vector<16x32xbf16>
    %c0_9 = arith.constant 0 : index
    %c0_10 = arith.constant 0 : index
    %26 = vector.load %arg4[%c0_9, %c0_10] : memref<32x192xbf16, #tpu.memory_space<vmem>>, vector<32x192xbf16>
    %cst_11 = arith.constant dense<0.000000e+00> : vector<16x192xf32>
    %27 = tpu.matmul %25, %26, %cst_11 {dimension_numbers = #tpu.dot_dimension_numbers<[1], [0], [0], [1], [0, 0, 1, 1], [], []>} : vector<16x32xbf16>, vector<32x192xbf16>, vector<16x192xf32> -> vector<16x192xf32>
    %28 = vector.extract_strided_slice %27 {offsets = [0, 0], sizes = [16, 16], strides = [1, 1]} : vector<16x192xf32> to vector<16x16xf32>
    %c0_12 = arith.constant 0 : index
    %c0_13 = arith.constant 0 : index
    %c0_14 = arith.constant 0 : index
    %29 = vector.load %arg5[%c0_12, %c0_13, %c0_14] : memref<4x16x16xf32, #tpu.memory_space<vmem>>, vector<1x16x16xf32>
    %30 = vector.shape_cast %29 : vector<1x16x16xf32> to vector<16x16xf32>
    %31 = vector.shape_cast %28 : vector<16x16xf32> to vector<1x16x16xf32>
    tpu.vector_store %arg5[%c0_12, %c0_13, %c0_14], %31 {strides = array<i32>} : memref<4x16x16xf32, #tpu.memory_space<vmem>>, vector<1x16x16xf32>,
    %32 = vector.extract_strided_slice %27 {offsets = [0, 64], sizes = [16, 16], strides = [1, 1]} : vector<16x192xf32> to vector<16x16xf32>
    %c0_15 = arith.constant 0 : index
    %c0_16 = arith.constant 0 : index
    %c0_17 = arith.constant 0 : index
    %33 = vector.load %arg6[%c0_15, %c0_16, %c0_17] : memref<4x16x16xf32, #tpu.memory_space<vmem>>, vector<1x16x16xf32>
    %34 = vector.shape_cast %33 : vector<1x16x16xf32> to vector<16x16xf32>
    %35 = vector.shape_cast %32 : vector<16x16xf32> to vector<1x16x16xf32>
    tpu.vector_store %arg6[%c0_15, %c0_16, %c0_17], %35 {strides = array<i32>} : memref<4x16x16xf32, #tpu.memory_space<vmem>>, vector<1x16x16xf32>,
    %36 = vector.extract_strided_slice %27 {offsets = [0, 128], sizes = [16, 16], strides = [1, 1]} : vector<16x192xf32> to vector<16x16xf32>
    %c0_18 = arith.constant 0 : index
    %c0_19 = arith.constant 0 : index
    %c0_20 = arith.constant 0 : index
    %37 = vector.load %arg7[%c0_18, %c0_19, %c0_20] : memref<4x16x16xf32, #tpu.memory_space<vmem>>, vector<1x16x16xf32>
    %38 = vector.shape_cast %37 : vector<1x16x16xf32> to vector<16x16xf32>
    %39 = vector.shape_cast %36 : vector<16x16xf32> to vector<1x16x16xf32>
    tpu.vector_store %arg7[%c0_18, %c0_19, %c0_20], %39 {strides = array<i32>} : memref<4x16x16xf32, #tpu.memory_space<vmem>>, vector<1x16x16xf32>,
    %40 = vector.extract_strided_slice %27 {offsets = [0, 16], sizes = [16, 16], strides = [1, 1]} : vector<16x192xf32> to vector<16x16xf32>
    %c1 = arith.constant 1 : index
    %c0_21 = arith.constant 0 : index
    %c0_22 = arith.constant 0 : index
    %41 = vector.load %arg5[%c1, %c0_21, %c0_22] : memref<4x16x16xf32, #tpu.memory_space<vmem>>, vector<1x16x16xf32>
    %42 = vector.shape_cast %41 : vector<1x16x16xf32> to vector<16x16xf32>
    %43 = vector.shape_cast %40 : vector<16x16xf32> to vector<1x16x16xf32>
    tpu.vector_store %arg5[%c1, %c0_21, %c0_22], %43 {strides = array<i32>} : memref<4x16x16xf32, #tpu.memory_space<vmem>>, vector<1x16x16xf32>,
    %44 = vector.extract_strided_slice %27 {offsets = [0, 80], sizes = [16, 16], strides = [1, 1]} : vector<16x192xf32> to vector<16x16xf32>
    %c1_23 = arith.constant 1 : index
    %c0_24 = arith.constant 0 : index
    %c0_25 = arith.constant 0 : index
    %45 = vector.load %arg6[%c1_23, %c0_24, %c0_25] : memref<4x16x16xf32, #tpu.memory_space<vmem>>, vector<1x16x16xf32>
    %46 = vector.shape_cast %45 : vector<1x16x16xf32> to vector<16x16xf32>
    %47 = vector.shape_cast %44 : vector<16x16xf32> to vector<1x16x16xf32>
    tpu.vector_store %arg6[%c1_23, %c0_24, %c0_25], %47 {strides = array<i32>} : memref<4x16x16xf32, #tpu.memory_space<vmem>>, vector<1x16x16xf32>,
    %48 = vector.extract_strided_slice %27 {offsets = [0, 144], sizes = [16, 16], strides = [1, 1]} : vector<16x192xf32> to vector<16x16xf32>
    %c1_26 = arith.constant 1 : index
    %c0_27 = arith.constant 0 : index
    %c0_28 = arith.constant 0 : index
    %49 = vector.load %arg7[%c1_26, %c0_27, %c0_28] : memref<4x16x16xf32, #tpu.memory_space<vmem>>, vector<1x16x16xf32>
    %50 = vector.shape_cast %49 : vector<1x16x16xf32> to vector<16x16xf32>
    %51 = vector.shape_cast %48 : vector<16x16xf32> to vector<1x16x16xf32>
    tpu.vector_store %arg7[%c1_26, %c0_27, %c0_28], %51 {strides = array<i32>} : memref<4x16x16xf32, #tpu.memory_space<vmem>>, vector<1x16x16xf32>,
    %52 = vector.extract_strided_slice %27 {offsets = [0, 32], sizes = [16, 16], strides = [1, 1]} : vector<16x192xf32> to vector<16x16xf32>
    %c2 = arith.constant 2 : index
    %c0_29 = arith.constant 0 : index
    %c0_30 = arith.constant 0 : index
    %53 = vector.load %arg5[%c2, %c0_29, %c0_30] : memref<4x16x16xf32, #tpu.memory_space<vmem>>, vector<1x16x16xf32>
    %54 = vector.shape_cast %53 : vector<1x16x16xf32> to vector<16x16xf32>
    %55 = vector.shape_cast %52 : vector<16x16xf32> to vector<1x16x16xf32>
    tpu.vector_store %arg5[%c2, %c0_29, %c0_30], %55 {strides = array<i32>} : memref<4x16x16xf32, #tpu.memory_space<vmem>>, vector<1x16x16xf32>,
    %56 = vector.extract_strided_slice %27 {offsets = [0, 96], sizes = [16, 16], strides = [1, 1]} : vector<16x192xf32> to vector<16x16xf32>
    %c2_31 = arith.constant 2 : index
    %c0_32 = arith.constant 0 : index
    %c0_33 = arith.constant 0 : index
    %57 = vector.load %arg6[%c2_31, %c0_32, %c0_33] : memref<4x16x16xf32, #tpu.memory_space<vmem>>, vector<1x16x16xf32>
    %58 = vector.shape_cast %57 : vector<1x16x16xf32> to vector<16x16xf32>
    %59 = vector.shape_cast %56 : vector<16x16xf32> to vector<1x16x16xf32>
    tpu.vector_store %arg6[%c2_31, %c0_32, %c0_33], %59 {strides = array<i32>} : memref<4x16x16xf32, #tpu.memory_space<vmem>>, vector<1x16x16xf32>,
    %60 = vector.extract_strided_slice %27 {offsets = [0, 160], sizes = [16, 16], strides = [1, 1]} : vector<16x192xf32> to vector<16x16xf32>
    %c2_34 = arith.constant 2 : index
    %c0_35 = arith.constant 0 : index
    %c0_36 = arith.constant 0 : index
    %61 = vector.load %arg7[%c2_34, %c0_35, %c0_36] : memref<4x16x16xf32, #tpu.memory_space<vmem>>, vector<1x16x16xf32>
    %62 = vector.shape_cast %61 : vector<1x16x16xf32> to vector<16x16xf32>
    %63 = vector.shape_cast %60 : vector<16x16xf32> to vector<1x16x16xf32>
    tpu.vector_store %arg7[%c2_34, %c0_35, %c0_36], %63 {strides = array<i32>} : memref<4x16x16xf32, #tpu.memory_space<vmem>>, vector<1x16x16xf32>,
    %64 = vector.extract_strided_slice %27 {offsets = [0, 48], sizes = [16, 16], strides = [1, 1]} : vector<16x192xf32> to vector<16x16xf32>
    %c3 = arith.constant 3 : index
    %c0_37 = arith.constant 0 : index
    %c0_38 = arith.constant 0 : index
    %65 = vector.load %arg5[%c3, %c0_37, %c0_38] : memref<4x16x16xf32, #tpu.memory_space<vmem>>, vector<1x16x16xf32>
    %66 = vector.shape_cast %65 : vector<1x16x16xf32> to vector<16x16xf32>
    %67 = vector.shape_cast %64 : vector<16x16xf32> to vector<1x16x16xf32>
    tpu.vector_store %arg5[%c3, %c0_37, %c0_38], %67 {strides = array<i32>} : memref<4x16x16xf32, #tpu.memory_space<vmem>>, vector<1x16x16xf32>,
    %68 = vector.extract_strided_slice %27 {offsets = [0, 112], sizes = [16, 16], strides = [1, 1]} : vector<16x192xf32> to vector<16x16xf32>
    %c3_39 = arith.constant 3 : index
    %c0_40 = arith.constant 0 : index
    %c0_41 = arith.constant 0 : index
    %69 = vector.load %arg6[%c3_39, %c0_40, %c0_41] : memref<4x16x16xf32, #tpu.memory_space<vmem>>, vector<1x16x16xf32>
    %70 = vector.shape_cast %69 : vector<1x16x16xf32> to vector<16x16xf32>
    %71 = vector.shape_cast %68 : vector<16x16xf32> to vector<1x16x16xf32>
    tpu.vector_store %arg6[%c3_39, %c0_40, %c0_41], %71 {strides = array<i32>} : memref<4x16x16xf32, #tpu.memory_space<vmem>>, vector<1x16x16xf32>,
    %72 = vector.extract_strided_slice %27 {offsets = [0, 176], sizes = [16, 16], strides = [1, 1]} : vector<16x192xf32> to vector<16x16xf32>
    %c3_42 = arith.constant 3 : index
    %c0_43 = arith.constant 0 : index
    %c0_44 = arith.constant 0 : index
    %73 = vector.load %arg7[%c3_42, %c0_43, %c0_44] : memref<4x16x16xf32, #tpu.memory_space<vmem>>, vector<1x16x16xf32>
    %74 = vector.shape_cast %73 : vector<1x16x16xf32> to vector<16x16xf32>
    %75 = vector.shape_cast %72 : vector<16x16xf32> to vector<1x16x16xf32>
    tpu.vector_store %arg7[%c3_42, %c0_43, %c0_44], %75 {strides = array<i32>} : memref<4x16x16xf32, #tpu.memory_space<vmem>>, vector<1x16x16xf32>,
    return
  }
  func.func @transform_0(%arg0: i32) -> (i32, i32) {
    %c0_i32 = arith.constant 0 : i32
    %c0_i32_0 = arith.constant 0 : i32
    return %arg0, %c0_i32 : i32, i32
  }
  func.func @transform_1(%arg0: i32) -> (i32, i32) {
    %c0_i32 = arith.constant 0 : i32
    %c0_i32_0 = arith.constant 0 : i32
    %c0_i32_1 = arith.constant 0 : i32
    return %c0_i32, %c0_i32_0 : i32, i32
  }
  func.func @transform_2(%arg0: i32) -> (i32, i32) {
    %c0_i32 = arith.constant 0 : i32
    %c0_i32_0 = arith.constant 0 : i32
    %c0_i32_1 = arith.constant 0 : i32
    return %c0_i32, %c0_i32_0 : i32, i32
  }
  func.func @transform_3(%arg0: i32) -> (i32, i32) {
    %c0_i32 = arith.constant 0 : i32
    %c0_i32_0 = arith.constant 0 : i32
    %c0_i32_1 = arith.constant 0 : i32
    return %c0_i32, %c0_i32_0 : i32, i32
  }
  func.func @transform_4(%arg0: i32) -> (i32, i32, i32) {
    %c0_i32 = arith.constant 0 : i32
    %c0_i32_0 = arith.constant 0 : i32
    %c0_i32_1 = arith.constant 0 : i32
    return %c0_i32, %arg0, %c0_i32_0 : i32, i32, i32
  }
  func.func @transform_5(%arg0: i32) -> (i32, i32, i32) {
    %c0_i32 = arith.constant 0 : i32
    %c0_i32_0 = arith.constant 0 : i32
    %c0_i32_1 = arith.constant 0 : i32
    return %c0_i32, %arg0, %c0_i32_0 : i32, i32, i32
  }
  func.func @transform_6(%arg0: i32) -> (i32, i32, i32) {
    %c0_i32 = arith.constant 0 : i32
    %c0_i32_0 = arith.constant 0 : i32
    %c0_i32_1 = arith.constant 0 : i32
    return %c0_i32, %arg0, %c0_i32_0 : i32, i32, i32
  }
}

module attributes {stable_mosaic.version = 11 : i64} {
  func.func @_flash_attn_kernel(%arg0: i32, %arg1: i32, %arg2: i32, %arg3: i32, %arg4: memref<1x1x8x16xf32, #tpu.memory_space<vmem>>, %arg5: memref<1x1x8x16xf32, #tpu.memory_space<vmem>>, %arg6: memref<1x1x8x16xf32, #tpu.memory_space<vmem>>, %arg7: memref<1x1x16xf32, #tpu.memory_space<vmem>>, %arg8: memref<1x1x16xf32, #tpu.memory_space<vmem>>, %arg9: memref<16x32xbf16, #tpu.memory_space<vmem>>, %arg10: memref<1x8x32xf32, #tpu.memory_space<vmem>>, %arg11: memref<8x1xf32, #tpu.memory_space<vmem>>, %arg12: memref<8x1xf32, #tpu.memory_space<vmem>>, %arg13: memref<8x16xf32, #tpu.memory_space<vmem>>, %arg14: memref<8x32xf32, #tpu.memory_space<vmem>>) attributes {dimension_semantics = [#tpu.dimension_semantics<parallel>, #tpu.dimension_semantics<parallel>, #tpu.dimension_semantics<arbitrary>, #tpu.dimension_semantics<arbitrary>], iteration_bounds = array<i64: 2, 1, 4, 1>, scalar_prefetch = 0 : i64, scratch_operands = 4 : i64, tpu.core_type = #tpu.core_type<tc>, window_params = [{transform_indices = @transform_0, window_bounds = array<i64: 1, 1, 8, 16>}, {transform_indices = @transform_1, window_bounds = array<i64: 1, 1, 8, 16>}, {transform_indices = @transform_2, window_bounds = array<i64: 1, 1, 8, 16>}, {transform_indices = @transform_3, window_bounds = array<i64: 1, 1, 16>}, {transform_indices = @transform_4, window_bounds = array<i64: 1, 1, 16>}, {transform_indices = @transform_5, window_bounds = array<i64: 16, 32>}, {transform_indices = @transform_6, window_bounds = array<i64: 1, 8, 32>}]} {
    %c0_i32 = arith.constant 0 : i32
    %0 = arith.cmpi eq, %arg2, %c0_i32 : i32
    %c0_i32_0 = arith.constant 0 : i32
    %1 = arith.cmpi eq, %arg3, %c0_i32_0 : i32
    %2 = arith.andi %0, %1 : i1
    %3 = arith.extui %2 : i1 to i32
    %c0_i32_1 = arith.constant 0 : i32
    %4 = arith.cmpi ne, %3, %c0_i32_1 : i32
    scf.if %4 {
      %cst_44 = arith.constant 0.000000e+00 : f32
      %73 = vector.broadcast %cst_44 : f32 to vector<8x32xf32>
      %c0_45 = arith.constant 0 : index
      %c0_46 = arith.constant 0 : index
      %74 = vector.load %arg14[%c0_45, %c0_46] : memref<8x32xf32, #tpu.memory_space<vmem>>, vector<8x32xf32>
      tpu.vector_store %arg14[%c0_45, %c0_46], %73 {strides = array<i32>} : memref<8x32xf32, #tpu.memory_space<vmem>>, vector<8x32xf32>,
    } else {
    }
    %c0_i32_2 = arith.constant 0 : i32
    %5 = arith.cmpi eq, %arg3, %c0_i32_2 : i32
    %6 = arith.extui %5 : i1 to i32
    %c0_i32_3 = arith.constant 0 : i32
    %7 = arith.cmpi ne, %6, %c0_i32_3 : i32
    scf.if %7 {
      %cst_44 = arith.constant 0xFF800000 : f32
      %73 = vector.broadcast %cst_44 : f32 to vector<8x1xf32>
      %c0_45 = arith.constant 0 : index
      %c0_46 = arith.constant 0 : index
      %74 = vector.load %arg11[%c0_45, %c0_46] : memref<8x1xf32, #tpu.memory_space<vmem>>, vector<8x1xf32>
      tpu.vector_store %arg11[%c0_45, %c0_46], %73 {strides = array<i32>} : memref<8x1xf32, #tpu.memory_space<vmem>>, vector<8x1xf32>,
      %cst_47 = arith.constant 0.000000e+00 : f32
      %75 = vector.broadcast %cst_47 : f32 to vector<8x1xf32>
      %c0_48 = arith.constant 0 : index
      %c0_49 = arith.constant 0 : index
      %76 = vector.load %arg12[%c0_48, %c0_49] : memref<8x1xf32, #tpu.memory_space<vmem>>, vector<8x1xf32>
      tpu.vector_store %arg12[%c0_48, %c0_49], %75 {strides = array<i32>} : memref<8x1xf32, #tpu.memory_space<vmem>>, vector<8x1xf32>,
      %cst_50 = arith.constant 0.000000e+00 : f32
      %77 = vector.broadcast %cst_50 : f32 to vector<8x16xf32>
      %c0_51 = arith.constant 0 : index
      %c0_52 = arith.constant 0 : index
      %78 = vector.load %arg13[%c0_51, %c0_52] : memref<8x16xf32, #tpu.memory_space<vmem>>, vector<8x16xf32>
      tpu.vector_store %arg13[%c0_51, %c0_52], %77 {strides = array<i32>} : memref<8x16xf32, #tpu.memory_space<vmem>>, vector<8x16xf32>,
    } else {
    }
    %c0 = arith.constant 0 : index
    %c0_4 = arith.constant 0 : index
    %c0_5 = arith.constant 0 : index
    %c0_6 = arith.constant 0 : index
    %8 = vector.load %arg4[%c0, %c0_4, %c0_5, %c0_6] : memref<1x1x8x16xf32, #tpu.memory_space<vmem>>, vector<1x1x8x16xf32>
    %9 = vector.shape_cast %8 : vector<1x1x8x16xf32> to vector<8x16xf32>
    %c0_7 = arith.constant 0 : index
    %c0_8 = arith.constant 0 : index
    %c0_9 = arith.constant 0 : index
    %c0_10 = arith.constant 0 : index
    %10 = vector.load %arg5[%c0_7, %c0_8, %c0_9, %c0_10] : memref<1x1x8x16xf32, #tpu.memory_space<vmem>>, vector<1x1x8x16xf32>
    %11 = vector.shape_cast %10 : vector<1x1x8x16xf32> to vector<8x16xf32>
    %c0_11 = arith.constant 0 : index
    %c0_12 = arith.constant 0 : index
    %c0_13 = arith.constant 0 : index
    %12 = vector.load %arg7[%c0_11, %c0_12, %c0_13] : memref<1x1x16xf32, #tpu.memory_space<vmem>>, vector<1x1x16xf32>
    %13 = vector.shape_cast %12 : vector<1x1x16xf32> to vector<1x16xf32>
    %c0_14 = arith.constant 0 : index
    %c0_15 = arith.constant 0 : index
    %c0_16 = arith.constant 0 : index
    %14 = vector.load %arg8[%c0_14, %c0_15, %c0_16] : memref<1x1x16xf32, #tpu.memory_space<vmem>>, vector<1x1x16xf32>
    %15 = vector.shape_cast %14 : vector<1x1x16xf32> to vector<1x16xf32>
    %16 = arith.mulf %9, %9 : vector<8x16xf32>
    %cst = arith.constant dense<0.000000e+00> : vector<8xf32>
    %17 = vector.multi_reduction <add>, %16, %cst [1] : vector<8x16xf32> to vector<8xf32>
    %18 = vector.shape_cast %17 : vector<8xf32> to vector<8x1xf32>
    %cst_17 = arith.constant 1.000000e-24 : f32
    %19 = vector.broadcast %cst_17 : f32 to vector<8x1xf32>
    %20 = arith.maximumf %18, %19 : vector<8x1xf32>
    %21 = math.rsqrt %20 : vector<8x1xf32>
    %22 = vector.broadcast %21 : vector<8x1xf32> to vector<8x16xf32>
    %23 = arith.mulf %9, %22 : vector<8x16xf32>
    %24 = vector.broadcast %13 : vector<1x16xf32> to vector<8x16xf32>
    %25 = arith.mulf %23, %24 : vector<8x16xf32>
    %26 = arith.mulf %11, %11 : vector<8x16xf32>
    %cst_18 = arith.constant dense<0.000000e+00> : vector<8xf32>
    %27 = vector.multi_reduction <add>, %26, %cst_18 [1] : vector<8x16xf32> to vector<8xf32>
    %28 = vector.shape_cast %27 : vector<8xf32> to vector<8x1xf32>
    %cst_19 = arith.constant 1.000000e-24 : f32
    %29 = vector.broadcast %cst_19 : f32 to vector<8x1xf32>
    %30 = arith.maximumf %28, %29 : vector<8x1xf32>
    %31 = math.rsqrt %30 : vector<8x1xf32>
    %32 = vector.broadcast %31 : vector<8x1xf32> to vector<8x16xf32>
    %33 = arith.mulf %11, %32 : vector<8x16xf32>
    %34 = vector.broadcast %15 : vector<1x16xf32> to vector<8x16xf32>
    %35 = arith.mulf %33, %34 : vector<8x16xf32>
    %36 = arith.truncf %25 : vector<8x16xf32> to vector<8x16xbf16>
    %37 = arith.truncf %35 : vector<8x16xf32> to vector<8x16xbf16>
    %cst_20 = arith.constant dense<0.000000e+00> : vector<8x8xf32>
    %38 = tpu.matmul %36, %37, %cst_20 {dimension_numbers = #tpu.dot_dimension_numbers<[1], [1], [0], [0], [0, 0, 1, 0], [], []>} : vector<8x16xbf16>, vector<8x16xbf16>, vector<8x8xf32> -> vector<8x8xf32>
    %c0_21 = arith.constant 0 : index
    %c0_22 = arith.constant 0 : index
    %39 = vector.load %arg11[%c0_21, %c0_22] : memref<8x1xf32, #tpu.memory_space<vmem>>, vector<8x1xf32>
    %cst_23 = arith.constant dense<0xFF800000> : vector<8xf32>
    %40 = vector.multi_reduction <maximumf>, %38, %cst_23 [1] : vector<8x8xf32> to vector<8xf32>
    %41 = vector.shape_cast %40 : vector<8xf32> to vector<8x1xf32>
    %42 = arith.maximumf %39, %41 : vector<8x1xf32>
    %43 = arith.subf %39, %42 : vector<8x1xf32>
    %44 = math.exp %43 : vector<8x1xf32>
    %45 = vector.broadcast %42 : vector<8x1xf32> to vector<8x8xf32>
    %46 = arith.subf %38, %45 : vector<8x8xf32>
    %47 = math.exp %46 : vector<8x8xf32>
    %c0_24 = arith.constant 0 : index
    %c0_25 = arith.constant 0 : index
    %48 = vector.load %arg12[%c0_24, %c0_25] : memref<8x1xf32, #tpu.memory_space<vmem>>, vector<8x1xf32>
    %49 = arith.mulf %44, %48 : vector<8x1xf32>
    %cst_26 = arith.constant dense<0.000000e+00> : vector<8xf32>
    %50 = vector.multi_reduction <add>, %47, %cst_26 [1] : vector<8x8xf32> to vector<8xf32>
    %51 = vector.shape_cast %50 : vector<8xf32> to vector<8x1xf32>
    %52 = arith.addf %49, %51 : vector<8x1xf32>
    %c0_27 = arith.constant 0 : index
    %c0_28 = arith.constant 0 : index
    %53 = vector.load %arg12[%c0_27, %c0_28] : memref<8x1xf32, #tpu.memory_space<vmem>>, vector<8x1xf32>
    tpu.vector_store %arg12[%c0_27, %c0_28], %52 {strides = array<i32>} : memref<8x1xf32, #tpu.memory_space<vmem>>, vector<8x1xf32>,
    %c0_29 = arith.constant 0 : index
    %c0_30 = arith.constant 0 : index
    %54 = vector.load %arg13[%c0_29, %c0_30] : memref<8x16xf32, #tpu.memory_space<vmem>>, vector<8x16xf32>
    %55 = vector.broadcast %44 : vector<8x1xf32> to vector<8x16xf32>
    %56 = arith.mulf %55, %54 : vector<8x16xf32>
    %57 = arith.truncf %47 : vector<8x8xf32> to vector<8x8xbf16>
    %c0_31 = arith.constant 0 : index
    %c0_32 = arith.constant 0 : index
    %c0_33 = arith.constant 0 : index
    %c0_34 = arith.constant 0 : index
    %58 = vector.load %arg6[%c0_31, %c0_32, %c0_33, %c0_34] : memref<1x1x8x16xf32, #tpu.memory_space<vmem>>, vector<1x1x8x16xf32>
    %59 = vector.shape_cast %58 : vector<1x1x8x16xf32> to vector<8x16xf32>
    %60 = arith.truncf %59 : vector<8x16xf32> to vector<8x16xbf16>
    %cst_35 = arith.constant dense<0.000000e+00> : vector<8x16xf32>
    %61 = tpu.matmul %57, %60, %cst_35 {dimension_numbers = #tpu.dot_dimension_numbers<[1], [0], [0], [1], [0, 0, 1, 1], [], []>} : vector<8x8xbf16>, vector<8x16xbf16>, vector<8x16xf32> -> vector<8x16xf32>
    %62 = arith.addf %56, %61 : vector<8x16xf32>
    %c0_36 = arith.constant 0 : index
    %c0_37 = arith.constant 0 : index
    %63 = vector.load %arg13[%c0_36, %c0_37] : memref<8x16xf32, #tpu.memory_space<vmem>>, vector<8x16xf32>
    tpu.vector_store %arg13[%c0_36, %c0_37], %62 {strides = array<i32>} : memref<8x16xf32, #tpu.memory_space<vmem>>, vector<8x16xf32>,
    %c0_38 = arith.constant 0 : index
    %c0_39 = arith.constant 0 : index
    %64 = vector.load %arg11[%c0_38, %c0_39] : memref<8x1xf32, #tpu.memory_space<vmem>>, vector<8x1xf32>
    tpu.vector_store %arg11[%c0_38, %c0_39], %42 {strides = array<i32>} : memref<8x1xf32, #tpu.memory_space<vmem>>, vector<8x1xf32>,
    %c0_i32_40 = arith.constant 0 : i32
    %65 = arith.cmpi eq, %arg3, %c0_i32_40 : i32
    %66 = arith.extui %65 : i1 to i32
    %c0_i32_41 = arith.constant 0 : i32
    %67 = arith.cmpi ne, %66, %c0_i32_41 : i32
    scf.if %67 {
      %c0_44 = arith.constant 0 : index
      %c0_45 = arith.constant 0 : index
      %73 = vector.load %arg12[%c0_44, %c0_45] : memref<8x1xf32, #tpu.memory_space<vmem>>, vector<8x1xf32>
      %74 = tpu.reciprocal %73 {approx = true} : vector<8x1xf32> -> vector<8x1xf32>
      %c0_46 = arith.constant 0 : index
      %c0_47 = arith.constant 0 : index
      %75 = vector.load %arg14[%c0_46, %c0_47] : memref<8x32xf32, #tpu.memory_space<vmem>>, vector<8x32xf32>
      %c0_48 = arith.constant 0 : index
      %c0_49 = arith.constant 0 : index
      %76 = vector.load %arg13[%c0_48, %c0_49] : memref<8x16xf32, #tpu.memory_space<vmem>>, vector<8x16xf32>
      %77 = vector.broadcast %74 : vector<8x1xf32> to vector<8x16xf32>
      %78 = arith.mulf %76, %77 : vector<8x16xf32>
      %79 = arith.truncf %78 : vector<8x16xf32> to vector<8x16xbf16>
      %c0_50 = arith.constant 0 : index
      %c0_51 = arith.constant 0 : index
      %80 = vector.load %arg9[%c0_50, %c0_51] : memref<16x32xbf16, #tpu.memory_space<vmem>>, vector<16x32xbf16>
      %cst_52 = arith.constant dense<0.000000e+00> : vector<8x32xf32>
      %81 = tpu.matmul %79, %80, %cst_52 {dimension_numbers = #tpu.dot_dimension_numbers<[1], [0], [0], [1], [0, 0, 1, 1], [], []>} : vector<8x16xbf16>, vector<16x32xbf16>, vector<8x32xf32> -> vector<8x32xf32>
      %82 = arith.addf %75, %81 : vector<8x32xf32>
      %c0_53 = arith.constant 0 : index
      %c0_54 = arith.constant 0 : index
      %83 = vector.load %arg14[%c0_53, %c0_54] : memref<8x32xf32, #tpu.memory_space<vmem>>, vector<8x32xf32>
      tpu.vector_store %arg14[%c0_53, %c0_54], %82 {strides = array<i32>} : memref<8x32xf32, #tpu.memory_space<vmem>>, vector<8x32xf32>,
    } else {
    }
    %c3_i32 = arith.constant 3 : i32
    %68 = arith.cmpi eq, %arg2, %c3_i32 : i32
    %c0_i32_42 = arith.constant 0 : i32
    %69 = arith.cmpi eq, %arg3, %c0_i32_42 : i32
    %70 = arith.andi %68, %69 : i1
    %71 = arith.extui %70 : i1 to i32
    %c0_i32_43 = arith.constant 0 : i32
    %72 = arith.cmpi ne, %71, %c0_i32_43 : i32
    scf.if %72 {
      %c0_44 = arith.constant 0 : index
      %c0_45 = arith.constant 0 : index
      %73 = vector.load %arg14[%c0_44, %c0_45] : memref<8x32xf32, #tpu.memory_space<vmem>>, vector<8x32xf32>
      %c0_46 = arith.constant 0 : index
      %c0_47 = arith.constant 0 : index
      %c0_48 = arith.constant 0 : index
      %74 = vector.load %arg10[%c0_46, %c0_47, %c0_48] : memref<1x8x32xf32, #tpu.memory_space<vmem>>, vector<1x8x32xf32>
      %75 = vector.shape_cast %74 : vector<1x8x32xf32> to vector<8x32xf32>
      %76 = vector.shape_cast %73 : vector<8x32xf32> to vector<1x8x32xf32>
      tpu.vector_store %arg10[%c0_46, %c0_47, %c0_48], %76 {strides = array<i32>} : memref<1x8x32xf32, #tpu.memory_space<vmem>>, vector<1x8x32xf32>,
    } else {
    }
    return
  }
  func.func @transform_0(%arg0: i32, %arg1: i32, %arg2: i32, %arg3: i32) -> (i32, i32, i32, i32) {
    %c0_i32 = arith.constant 0 : i32
    %c0_i32_0 = arith.constant 0 : i32
    return %arg2, %arg0, %arg1, %c0_i32 : i32, i32, i32, i32
  }
  func.func @transform_1(%arg0: i32, %arg1: i32, %arg2: i32, %arg3: i32) -> (i32, i32, i32, i32) {
    %c0_i32 = arith.constant 0 : i32
    %c0_i32_0 = arith.constant 0 : i32
    return %arg2, %arg0, %arg3, %c0_i32 : i32, i32, i32, i32
  }
  func.func @transform_2(%arg0: i32, %arg1: i32, %arg2: i32, %arg3: i32) -> (i32, i32, i32, i32) {
    %c0_i32 = arith.constant 0 : i32
    %c0_i32_0 = arith.constant 0 : i32
    return %arg2, %arg0, %arg3, %c0_i32 : i32, i32, i32, i32
  }
  func.func @transform_3(%arg0: i32, %arg1: i32, %arg2: i32, %arg3: i32) -> (i32, i32, i32) {
    %c0_i32 = arith.constant 0 : i32
    %c0_i32_0 = arith.constant 0 : i32
    %c0_i32_1 = arith.constant 0 : i32
    return %arg2, %c0_i32, %c0_i32_0 : i32, i32, i32
  }
  func.func @transform_4(%arg0: i32, %arg1: i32, %arg2: i32, %arg3: i32) -> (i32, i32, i32) {
    %c0_i32 = arith.constant 0 : i32
    %c0_i32_0 = arith.constant 0 : i32
    %c0_i32_1 = arith.constant 0 : i32
    return %arg2, %c0_i32, %c0_i32_0 : i32, i32, i32
  }
  func.func @transform_5(%arg0: i32, %arg1: i32, %arg2: i32, %arg3: i32) -> (i32, i32) {
    %c0_i32 = arith.constant 0 : i32
    %c0_i32_0 = arith.constant 0 : i32
    return %arg2, %c0_i32 : i32, i32
  }
  func.func @transform_6(%arg0: i32, %arg1: i32, %arg2: i32, %arg3: i32) -> (i32, i32, i32) {
    %c0_i32 = arith.constant 0 : i32
    %c0_i32_0 = arith.constant 0 : i32
    return %arg0, %arg1, %c0_i32 : i32, i32, i32
  }
}

</mosaic_0001>

<bundles_post_ra>
// kernel: attention_forward.2
= control target key start
LH: loop header
LB: loop body
LE: loop exit
PB: predicated region body
PF: predicated region fallthrough
CT: control target
= control target key end

     0   :  { %vm23_vm0 = vcmask 261120   ;;  %v293_v15 = vmov 0   ;;  %vm140_vm1 = vcmask 130048   ;;  %s294_s11 = smov 112   ;;  %s295_s12 = smov 64   ;;  %s465_s0 = inlined_call_operand.vmem [shape: f32[16,32], index: 0, kind: input, shape index: {}]   ;;  %s466_s3 = inlined_call_operand.vmem [shape: bf16[32,192], index: 3, kind: input, shape index: {}]   ;;  %s467_s1 = inlined_call_operand.vmem [shape: f32[1,32], index: 1, kind: input, shape index: {}]   ;;  %s468_s2 = inlined_call_operand.vmem [shape: f32[1,32], index: 2, kind: input, shape index: {}]   ;;  %s469_s4 = inlined_call_operand.vmem [shape: f32[4,16,16], index: 4, kind: output, shape index: {0}]   ;;  %s470_s6 = inlined_call_operand.vmem [shape: f32[4,16,16], index: 6, kind: output, shape index: {2}]   ;;  %s471_s5 = inlined_call_operand.vmem [shape: f32[4,16,16], index: 5, kind: output, shape index: {1}]  }
   0x1   :  { %v21_v0 = vld [vmem:[%s465_s0] sm:$0xff]  ;;  %v22_v1 = vld [vmem:[%s465_s0 + $0x8] sm:$0xff]  ;;  %v283_v14 = vld [vmem:[%s466_s3 + $0x14] ss:$8 sps:$4 sm:$0xff]   ;;  %129 = vmatprep.mubr.bf16.mxu0 %v293_v15  ;;  %s296_s15 = smov 48   ;;  %s297_s20 = smov 96  }
   0x2   :  { %v24_v2 = vsel %vm23_vm0, %v21_v0, 0.0  ;;  %v27_v3 = vsel %vm23_vm0, %v22_v1, 0.0  ;;  %v285_v16 = vld [vmem:[%s466_s3 + $0x10] ss:$8 sps:$4 sm:$0xff]   ;;  %109 = vmatprep.subr.bf16.mxu0 %v283_v14  ;;  %v286_v17 = vld [vmem:[%s466_s3 + $0x4] ss:$8 sps:$4 sm:$0xff]  }
   0x3   :  { %25 = vadd.xlane.f32.xlu0 %v24_v2  ;;  %110 = vmatpush1.bf16.msra.mxu0 %v285_v16  ;;  %v288_v18 = vld [vmem:[%s466_s3] ss:$8 sps:$4 sm:$0xff]   ;;  %s298_s21 = smov 32   ;;  %s299_s22 = smov 80  }
   0x4   :  { %111 = vmatprep.subr.bf16.mxu0 %v286_v17  ;;  %v250_v27 = vld [vmem:[%s467_s1] ss:$0 sm:$0xff]  ;;  %s300_s23 = smov 16  }
   0x5   :  { %v251_v31 = vld [vmem:[%s468_s2] ss:$0 sm:$0xff] }
   0x7   :  { %28 = vadd.xlane.f32.xlu0 %v27_v3  ;;  %112 = vmatpush1.bf16.msra.mxu0 %v288_v18 }
  0x8c   :  { %v26_v4 = vpop.xlane.xlu0 %25 }
  0x8d   :  { %v31_v5 = vmul.f32 0.03125, %v26_v4 }
  0x8f   :  { %v33_v6 = vsub.f32 %v21_v0, %v31_v5 }
  0x90   :  { %v29_v7 = vpop.xlane.xlu0 %28 }
  0x91   :  { %v32_v8 = vmul.f32 0.03125, %v29_v7  ;;  %v35_v9 = vmul.f32 %v33_v6, %v33_v6 }
  0x93   :  { %v34_v10 = vsub.f32 %v22_v1, %v32_v8  ;;  %v37_v11 = vsel %vm23_vm0, %v35_v9, 0.0 }
  0x94   :  { %38 = vadd.xlane.f32.xlu1 %v37_v11 }
  0x95   :  { %v36_v12 = vmul.f32 %v34_v10, %v34_v10 }
  0x97   :  { %v40_v13 = vsel %vm23_vm0, %v36_v12, 0.0 }
  0x98   :  { %41 = vadd.xlane.f32.xlu1 %v40_v13 }
 0x11d   :  { %v39_v19 = vpop.xlane.xlu1 %38 }
 0x11e   :  { %v43_v20 = vmul.f32 0.03125, %v39_v19 }
 0x120   :  { %v45_v21 = vadd.f32 1e-05, %v43_v20 }
 0x121   :  { %v42_v22 = vpop.xlane.xlu1 %41 }
 0x122   :  { %289 = vrsqrt.f32 %v45_v21  ;;  %v44_v23 = vmul.f32 0.03125, %v42_v22 }
 0x124   :  { %v46_v24 = vadd.f32 1e-05, %v44_v23 }
 0x126   :  { %291 = vrsqrt.f32 %v46_v24 }
 0x12f   :  { %v290_v25 = vpop.eup %289 }
 0x130   :  { %v49_v26 = vmul.f32 %v290_v25, %v33_v6 }
 0x132   :  { %v58_v30 = vmul.f32 %v250_v27, %v49_v26 }
 0x133   :  { %v292_v28 = vpop.eup %291 }
 0x134   :  { %v50_v29 = vmul.f32 %v292_v28, %v34_v10  ;;  %v67_v33 = vadd.f32 %v251_v31, %v58_v30 }
 0x136   :  { %v59_v32 = vmul.f32 %v250_v27, %v50_v29 }
 0x138   :  { %v68_v34 = vadd.f32 %v251_v31, %v59_v32 }
 0x13a   :  { %v69_v35 = vpack.c.bf16 %v68_v34, %v67_v33 }
 0x13c   :  { %256 = vmatmul.mubr.msk.bf16.vlgmr.msra.gmra.mxu0 %vm23_vm0, %v69_v35 }
 0x1fc   :  { %v131_v36 = vpop.f32.mrf.mxu0 }
 0x1fd   :  { %155 = vrot.lane.b32.xlu1 %v131_v36, %s294_s11  ;;  %145 = vrot.lane.b32.xlu0 %v131_v36, %s295_s12  ;;  %141 = vst.msk [vmem:[%s469_s4] sm:$0xff] %vm140_vm1, %v131_v36 }
 0x1fe   :  { %v133_v37 = vpop.f32.mrf.mxu0 }
 0x1ff   :  { %153 = vst.msk [vmem:[%s470_s6] sm:$0xff] %vm140_vm1, %v133_v37 }
 0x200   :  { %v135_v38 = vpop.f32.mrf.mxu0 }
 0x201   :  { %164 = vrot.lane.b32.xlu0 %v131_v36, %s296_s15  ;;  %147 = vrot.lane.b32.xlu1 %v135_v38, %s295_s12  ;;  %142 = vst.msk [vmem:[%s469_s4 + $0x8] sm:$0xff] %vm140_vm1, %v135_v38 }
 0x202   :  { %v137_v39 = vpop.f32.mrf.mxu0 }
 0x203   :  { %154 = vst.msk [vmem:[%s470_s6 + $0x8] sm:$0xff] %vm140_vm1, %v137_v39 }
 0x205   :  { %184 = vrot.lane.b32.xlu0 %v131_v36, %s297_s20  ;;  %157 = vrot.lane.b32.xlu1 %v135_v38, %s294_s11 }
 0x209   :  { %193 = vrot.lane.b32.xlu0 %v131_v36, %s298_s21  ;;  %166 = vrot.lane.b32.xlu1 %v135_v38, %s296_s15 }
 0x20d   :  { %211 = vrot.lane.b32.xlu0 %v131_v36, %s299_s22  ;;  %186 = vrot.lane.b32.xlu1 %v135_v38, %s297_s20 }
 0x211   :  { %220 = vrot.lane.b32.xlu0 %v131_v36, %s300_s23  ;;  %195 = vrot.lane.b32.xlu1 %v135_v38, %s298_s21 }
 0x215   :  { %175 = vrot.lane.b32.xlu0 %v133_v37, %s294_s11  ;;  %213 = vrot.lane.b32.xlu1 %v135_v38, %s299_s22 }
 0x219   :  { %202 = vrot.lane.b32.xlu0 %v133_v37, %s297_s20  ;;  %222 = vrot.lane.b32.xlu1 %v135_v38, %s300_s23 }
 0x21d   :  { %229 = vrot.lane.b32.xlu0 %v133_v37, %s299_s22  ;;  %177 = vrot.lane.b32.xlu1 %v137_v39, %s294_s11 }
 0x221   :  { %204 = vrot.lane.b32.xlu1 %v137_v39, %s297_s20 }
 0x225   :  { %231 = vrot.lane.b32.xlu1 %v137_v39, %s299_s22 }
 0x26f   :  { %v156_v40 = vpop.permute.xlu1 %155  ;;  %v146_v41 = vpop.permute.xlu0 %145 }
 0x270   :  { %257 = vst.msk [vmem:[%s469_s4 + $0x10] sm:$0xff] %vm140_vm1, %v156_v40  ;;  %151 = vst.msk [vmem:[%s471_s5] sm:$0xff] %vm140_vm1, %v146_v41 }
 0x273   :  { %v165_v42 = vpop.permute.xlu0 %164  ;;  %v148_v43 = vpop.permute.xlu1 %147 }
 0x274   :  { %259 = vst.msk [vmem:[%s471_s5 + $0x10] sm:$0xff] %vm140_vm1, %v165_v42  ;;  %152 = vst.msk [vmem:[%s471_s5 + $0x8] sm:$0xff] %vm140_vm1, %v148_v43 }
 0x277   :  { %v185_v44 = vpop.permute.xlu0 %184  ;;  %v158_v45 = vpop.permute.xlu1 %157 }
 0x278   :  { %263 = vst.msk [vmem:[%s469_s4 + $0x20] sm:$0xff] %vm140_vm1, %v185_v44  ;;  %258 = vst.msk [vmem:[%s469_s4 + $0x18] sm:$0xff] %vm140_vm1, %v158_v45 }
 0x27b   :  { %v194_v46 = vpop.permute.xlu0 %193  ;;  %v167_v47 = vpop.permute.xlu1 %166 }
 0x27c   :  { %265 = vst.msk [vmem:[%s471_s5 + $0x20] sm:$0xff] %vm140_vm1, %v194_v46  ;;  %260 = vst.msk [vmem:[%s471_s5 + $0x18] sm:$0xff] %vm140_vm1, %v167_v47 }
 0x27f   :  { %v212_v48 = vpop.permute.xlu0 %211  ;;  %v187_v49 = vpop.permute.xlu1 %186 }
 0x280   :  { %269 = vst.msk [vmem:[%s469_s4 + $0x30] sm:$0xff] %vm140_vm1, %v212_v48  ;;  %264 = vst.msk [vmem:[%s469_s4 + $0x28] sm:$0xff] %vm140_vm1, %v187_v49 }
 0x283   :  { %v221_v50 = vpop.permute.xlu0 %220  ;;  %v196_v51 = vpop.permute.xlu1 %195 }
 0x284   :  { %271 = vst.msk [vmem:[%s471_s5 + $0x30] sm:$0xff] %vm140_vm1, %v221_v50  ;;  %266 = vst.msk [vmem:[%s471_s5 + $0x28] sm:$0xff] %vm140_vm1, %v196_v51 }
 0x287   :  { %v176_v52 = vpop.permute.xlu0 %175  ;;  %v214_v53 = vpop.permute.xlu1 %213 }
 0x288   :  { %261 = vst.msk [vmem:[%s470_s6 + $0x10] sm:$0xff] %vm140_vm1, %v176_v52  ;;  %270 = vst.msk [vmem:[%s469_s4 + $0x38] sm:$0xff] %vm140_vm1, %v214_v53 }
 0x28b   :  { %v203_v54 = vpop.permute.xlu0 %202  ;;  %v223_v55 = vpop.permute.xlu1 %222 }
 0x28c   :  { %267 = vst.msk [vmem:[%s470_s6 + $0x20] sm:$0xff] %vm140_vm1, %v203_v54  ;;  %272 = vst.msk [vmem:[%s471_s5 + $0x38] sm:$0xff] %vm140_vm1, %v223_v55 }
 0x28f   :  { %v230_v56 = vpop.permute.xlu0 %229  ;;  %v178_v57 = vpop.permute.xlu1 %177 }
 0x290   :  { %273 = vst.msk [vmem:[%s470_s6 + $0x30] sm:$0xff] %vm140_vm1, %v230_v56  ;;  %262 = vst.msk [vmem:[%s470_s6 + $0x18] sm:$0xff] %vm140_vm1, %v178_v57 }
 0x293   :  { %v205_v58 = vpop.permute.xlu1 %204 }
 0x294   :  { %268 = vst.msk [vmem:[%s470_s6 + $0x28] sm:$0xff] %vm140_vm1, %v205_v58 }
 0x297   :  { %v232_v59 = vpop.permute.xlu1 %231 }
 0x298   :  { %274 = vst.msk [vmem:[%s470_s6 + $0x38] sm:$0xff] %vm140_vm1, %v232_v59 }

// kernel: attention_forward.3
= control target key start
LH: loop header
LB: loop body
LE: loop exit
PB: predicated region body
PF: predicated region fallthrough
CT: control target
= control target key end

     0   :  { %11 = vsyncpa [#allocation7], 0  ;;  %s1337_s0 = inlined_call_operand.vmem [shape: f32[4,2,8,16], index: 0, kind: input, shape index: {}]   ;;  %s1338_s1 = inlined_call_operand.vmem [shape: f32[4,2,8,16], index: 1, kind: input, shape index: {}]   ;;  %s1339_s2 = inlined_call_operand.vmem [shape: f32[4,2,8,16], index: 2, kind: input, shape index: {}]   ;;  %s1340_s3 = inlined_call_operand.vmem [shape: f32[4,1,16], index: 3, kind: input, shape index: {}]   ;;  %s1341_s4 = inlined_call_operand.vmem [shape: f32[4,1,16], index: 4, kind: input, shape index: {}]   ;;  %s1342_s5 = inlined_call_operand.vmem [shape: bf16[64,32], index: 5, kind: input, shape index: {}]   ;;  %s1343_s6 = inlined_call_operand.hbm [shape: f32[2,8,32], index: 6, kind: output, shape index: {}]  }
   0x1   :  { %13 = vsyncpa [#allocation7 + $0x1], 0  ;;  %s1142_s21 = smov 0   ;;  %s1144_s22 = smov 0  }
   0x2   :  { %s1146_s23 = smov 0   ;;  %s1148_s24 = smov 0  }
   0x3   :  { %s1150_s25 = smov 0   ;;  %s1152_s26 = smov 0  }
   0x4   :  { %s1154_s27 = smov 0   ;;  %s1156_s28 = smov 0  }
   0x5 LB: > { %1350 = sst [smem:[#allocation9_spill]] %s1079_s23  ;;  %s866_s29 = sadd.s32 4294967295, %s1099_s28   ;;  %s1099_s28 = sphi %s1156_s28, %s19_s28   ;;  %s1095_s27 = sphi %s1154_s27, %s1368_s27   ;;  %s1091_s26 = sphi %s1152_s26, %s1367_s26   ;;  %s1087_s25 = sphi %s1150_s25, %s1366_s25   ;;  %s1083_s24 = sphi %s1148_s24, %s1365_s24   ;;  %s1079_s23 = sphi %s1146_s23, %s1364_s23   ;;  %s1075_s22 = sphi %s1144_s22, %s1370_s22   ;;  %s1071_s21 = sphi %s1142_s21, %s1369_s21  }
   0x6   : > { %1351 = sst [smem:[#allocation10_spill]] %s1091_s26  ;;  %s867_s30 = sadd.s32 4294967294, %s1099_s28  }
   0x7   : > { %1352 = sst [smem:[#allocation11_spill]] %s1095_s27  ;;  %s37_s7 = sadd.s32 1, %s1091_s26 }
   0x8   : > { %p39_p0 = scmp.ge.s32.totalorder %s37_s7, 4  ;;  %s45_s8 = sadd.s32 1, %s1095_s27 }
   0x9   : > { %p232_p1 = scmp.ne.s32.totalorder %s1079_s23, %s1075_s22  ;;  %p233_p2 = scmp.eq.s32.totalorder %s866_s29, 7 }
   0xa   : > { %s1372_s7 = smov (%p39_p0, %s37_s7), 0  ;;  %s1374_s8 = smov (!%p39_p0, %s45_s8), %s1095_s27 }
   0xb   : > { %1353 = sst [smem:[#allocation12_spill]] %s1372_s7  ;;  %p1191_p3 = por %p233_p2, %p232_p1 }
   0xc   : > { %p238_p4 = scmp.ne.s32.totalorder %s1075_s22, %s1071_s21  ;;  %p47_p5 = scmp.ge.s32.totalorder %s1374_s8, 2 }
   0xd   : > { %p239_p6 = scmp.eq.s32.totalorder %s867_s30, 7  ;;  %p870_p7 = scmp.ge.s32.totalorder %s1099_s28, 1 }
   0xe   : > { %p320_p8 = scmp.lt.s32.totalorder %s1099_s28, 9  ;;  %s1376_s8 = smov (%p47_p5, %s1374_s8), 0 }
   0xf   : > { %1355 = sst [smem:[#allocation13_spill]] %s1376_s8  ;;  %p1201_p9 = por %p239_p6, %p238_p4 }
  0x10   : > { %p321_p10 = pnand %p870_p7, %p320_p8  ;;  %s217_s11 = ssub.s32 %s1095_s27, %s1376_s8 }
  0x11   : > { %s1356_s10 = scalar_select %p1201_p9, 1, 0 }
  0x12   : > { %s222_s12 = sadd.s32 1, %s1079_s23  ;;  %p220_p11 = scmp.eq.s32.totalorder %s217_s11, 0 }
  0x13   : > { %1357 = sst [smem:[#allocation14_spill]] %s1356_s10  ;;  %324 = sbr.rel (%p321_p10) target bundleno = 1204 (0x4b4), region = 44 }
  0x14   : > { %s1209_s13 = scalar_select %p220_p11, %s1079_s23, %s222_s12  }
  0x15   : > { %s1345_s14 = sand.u32 (!%p321_p10), 1, %s1075_s22   ;;  %p389_p12 = scmp.lt.s32.totalorder (!%p321_p10), %s1083_s24, 3 }
  0x16   : > { %1358 = sst [smem:[#allocation15_spill]] %s1209_s13  ;;  %s1215_s15 = sshll.u32 (!%p321_p10), %s1345_s14, 3 }
  0x17   : > { %p391_p13 = scmp.lt.s32.totalorder (!%p321_p10), %s1087_s25, 1  ;;  %s878_s16 = sshll.u32 (!%p321_p10), %s1083_s24, 1 }
  0x18   : > { %s1220_s17 = scalar_select %p389_p12, %s1083_s24, 3 }
  0x19   : > { %s392_s18 = scalar_select %p391_p13, %s1087_s25, 1 }
  0x1a   : > { %s872_s19 = sshll.u32 %s1220_s17, 1  ;;  %p429_p0 = scmp.lt.s32.totalorder %s878_s16, 7 }
  0x1b   : > { %s397_s11 = sadd.s32 %s872_s19, %s392_s18  ;;  %p435_p1 = scmp.eq.s32.totalorder %s1083_s24, 0 }
  0x1c   : > { %s1232_s7 = sshll.u32 %s397_s11, 3  ;;  %s1378_s16 = smov (!%p429_p0, %s878_s16), 7  ;;  %vm441_vm0 = vcmask (%p435_p1), 261120   ;;  %v1101_v0 = vmov (%p435_p1), 0.0  }
  0x1d   : > { %s399_s13 = scalar_lea.vmem %s1337_s0, %s1232_s7  ;;  %s410_s20 = scalar_lea.vmem %s1338_s1, %s1232_s7  ;;  %442 = vst.msk [vmem:[#allocation5] sm:$0xff] (%p435_p1), %vm441_vm0, %v1101_v0 }
  0x1e   : > { %s421_s19 = scalar_lea.vmem %s1339_s2, %s1232_s7  ;;  %s879_s8 = sshll.u32 %s1378_s16, 2 }
  0x1f   : > { %s1250_s30 = scalar_lea.vmem %s1342_s5, %s879_s8  ;;  %s388_s14 = scalar_lea.vmem [#allocation6], %s1215_s15 }
  0x20   : > { %440 = sbr.rel (!%p435_p1) target bundleno = 37 (0x25), region = 48 }
  0x25 PF: > { %vm449_vm1 = vcmask 130048   ;;  %v452_v1 = vld [vmem:[%s410_s20] sm:$0xff]  ;;  %v1102_v7 = vmov 0.0   ;;  %vm1103_vm2 = vmmov 0   ;;  %s1359_s27 = scalar_lea.vmem %s1341_s4, %s1220_s17  ;;  %s1360_s16 = scalar_lea.vmem %s1340_s3, %s1220_s17  ;;  %vm533_vm3 = vcmask 64512   ;;  %v622_v0 = vld [vmem:[#allocation5] sm:$0xff] }
  0x26   : > { %v451_v2 = vld [vmem:[%s399_s13] sm:$0xff]  ;;  %v470_v3 = vmul.f32 %v452_v1, %v452_v1  ;;  %450 = vst.msk [vmem:[#allocation4] sm:$0xff] %vm449_vm1, %v1102_v7  ;;  %900 = vmatprep.subr.bf16.mxu0 %v1102_v7  ;;  %906 = vmatprep.subr.bf16.mxu1 %v1102_v7  ;;  %vm446_vm4 = vcmask 7168   ;;  %v1104_v27 = vmov -inf   ;;  %v1105_v29 = vmov 0   ;;  %p685_p2 = scmp.eq.s32.totalorder %s1083_s24, 3 }
  0x27   : > { %v455_v4 = vmul.f32 %v451_v2, %v451_v2  ;;  %902 = vmatprep.mubr.msk.bf16.mxu0 %vm1103_vm2, %v1102_v7  ;;  %908 = vmatprep.mubr.msk.bf16.mxu1 %vm1103_vm2, %v1102_v7  ;;  %v882_v13 = vld [vmem:[%s1359_s27] ss:$0 sm:$0xff]  ;;  %447 = vst.msk [vmem:[#allocation2] sm:$0xff] %vm446_vm4, %v1104_v27  ;;  %448 = vst.msk [vmem:[#allocation3] sm:$0xff] %vm446_vm4, %v1102_v7  ;;  %vm570_vm5 = vcmask 1043456   ;;  %vm683_vm6 = vcmask 261120  }
  0x28   : > { %v471_v5 = vsel %vm449_vm1, %v470_v3, 0.0  ;;  %v881_v17 = vld [vmem:[%s1360_s16] ss:$0 sm:$0xff]  ;;  %994 = vset.pattern.permute.xlu1 %v1105_v29  ;;  %995 = vset.pattern.permute.xlu0 %v1105_v29 }
  0x29   : > { %472 = vadd.xlane.f32.xlu0 %v471_v5  ;;  %v457_v6 = vsel %vm449_vm1, %v455_v4, 0.0  ;;  %v565_v34 = vld [vmem:[%s421_s19] sm:$0xff] }
  0x2a   : > { %v566_v35 = vpack.c.bf16 %v565_v34, %v565_v34  ;;  %v996_v45 = vld [vmem:[%s1250_s30] sm:$0xff]  }
  0x2c   : > { %v572_v36 = vsel %vm570_vm5, %v566_v35, 0 }
  0x2d   : > { %458 = vadd.xlane.f32.xlu0 %v457_v6  ;;  %907 = vmatpush3.bf16.msra.mxu1 %v572_v36  ;;  %v557_v52 = vld [vmem:[#allocation4] sm:$0xff] }
  0x2e   : > { %v532_v30 = vld [vmem:[#allocation2] sm:$0xff]  ;;  %912 = vmatprep.subr.bf16.mxu1 %v1102_v7  ;;  %v549_v46 = vld [vmem:[#allocation3] sm:$0xff] }
  0xb2   : > { %v473_v8 = vpop.xlane.xlu0 %472 }
  0xb3   : > { %v474_v9 = vmax.f32 %v473_v8, 1e-24 }
  0xb5   : > { %997 = vrsqrt.f32 %v474_v9 }
  0xb6   : > { %v459_v10 = vpop.xlane.xlu0 %458 }
  0xb7   : > { %v460_v11 = vmax.f32 %v459_v10, 1e-24 }
  0xb9   : > { %999 = vrsqrt.f32 %v460_v11 }
  0xc2   : > { %v998_v12 = vpop.eup %997 }
  0xc3   : > { %v476_v14 = vmul.f32 %v998_v12, %v452_v1 }
  0xc5   : > { %v483_v15 = vmul.f32 %v882_v13, %v476_v14 }
  0xc6   : > { %v1000_v16 = vpop.eup %999 }
  0xc7   : > { %v485_v18 = vpack.c.bf16 %v483_v15, %v483_v15  ;;  %v462_v19 = vmul.f32 %v1000_v16, %v451_v2 }
  0xc9   : > { %v490_v20 = vsel %vm449_vm1, %v485_v18, 0  ;;  %v469_v21 = vmul.f32 %v881_v17, %v462_v19 }
  0xca   : > { %901 = vmatpush3.bf16.xpose.msra.mxu0 %v490_v20 }
  0xcb   : > { %v484_v22 = vpack.c.bf16 %v469_v21, %v469_v21 }
  0xd1   : > { %903 = vmatmul.mubr.msk.bf16.vlgmr.msra.gmra.mxu0 %vm449_vm1, %v484_v22 }
 0x191   : > { %v526_v23 = vpop.f32.mrf.mxu0 }
 0x192   : > { %v534_v24 = vsel %vm533_vm3, %v526_v23, -inf }
 0x193   : > { %535 = vmax.xlane.f32.xlu1 %v534_v24  ;;  %v904_v25 = vpop.f32.mrf.mxu0 }
 0x195   : > { %v529_v26 = vpop.f32.mrf.mxu0 }
 0x197   : > { %v905_v28 = vpop.f32.mrf.mxu0 }
 0x21c   : > { %v536_v31 = vpop.xlane.xlu1 %535 }
 0x21d   : > { %v537_v32 = vmax.f32 %v532_v30, %v536_v31 }
 0x21f   : > { %v538_v33 = vsub.f32 %v532_v30, %v537_v32  ;;  %616 = vst.msk [vmem:[#allocation2] sm:$0xff] %vm446_vm4, %v537_v32  ;;  %543 = vperm.xlu1 %994, %v537_v32  }
 0x221   : > { %v539_v43 = vmul.f32 1.442695, %v538_v33 }
 0x29a   : > { %v544_v37 = vpop.permute.xlu1 %543 }
 0x29b   : > { %v546_v38 = vsub.f32 %v526_v23, %v544_v37 }
 0x29d   : > { %v547_v39 = vmul.f32 1.442695, %v546_v38 }
 0x29f   : > { %1001 = vpow2.f32 %v547_v39 }
 0x2a0   : > { %1003 = vpow2.f32 %v539_v43 }
 0x2ac   : > { %v1002_v40 = vpop.eup %1001 }
 0x2ad   : > { %v551_v41 = vsel %vm533_vm3, %v1002_v40, 0.0  ;;  %v564_v42 = vpack.c.bf16 %v1002_v40, %v1002_v40  ;;  %v1004_v44 = vpop.eup %1003 }
 0x2ae   : > { %552 = vadd.xlane.f32.xlu0 %v551_v41  ;;  %v550_v47 = vmul.f32 %v1004_v44, %v549_v46 }
 0x2af   : > { %909 = vmatmul.mubr.msk.bf16.vlgmr.msra.gmra.mxu1 %vm533_vm3, %v564_v42 }
 0x2b0   : > { %914 = vmatprep.mubr.msk.bf16.mxu1 %vm1103_vm2, %v1102_v7  ;;  %913 = vmatpush3.bf16.msra.mxu1 %v996_v45 }
 0x2c4   : > { %560 = vperm.xlu0 %995, %v1004_v44  }
 0x337   : > { %v553_v48 = vpop.xlane.xlu0 %552 }
 0x338   : > { %v554_v49 = vadd.f32 %v553_v48, %v550_v47 }
 0x33a   : > { %556 = vst.msk [vmem:[#allocation3] sm:$0xff] %vm446_vm4, %v554_v49 }
 0x33f   : > { %v561_v53 = vpop.permute.xlu0 %560 }
 0x340   : > { %v563_v54 = vmul.f32 %v561_v53, %v557_v52 }
 0x341   : > { %v620_v50 = vld [vmem:[#allocation3] sm:$0xff] }
 0x342   : > { %1005 = vrcp.f32 %v620_v50 }
 0x34f   : > { %v1006_v51 = vpop.eup %1005 }
 0x350   : > { %626 = vperm.xlu1 %994, %v1006_v51  }
 0x36f   : > { %v608_v55 = vpop.f32.mrf.mxu1 }
 0x370   : > { %v614_v56 = vadd.f32 %v608_v55, %v563_v54 }
 0x371   : > { %v910_v57 = vpop.f32.mrf.mxu1 }
 0x372   : > { %615 = vst.msk [vmem:[#allocation4] sm:$0xff] %vm449_vm1, %v614_v56 }
 0x373   : > { %v611_v58 = vpop.f32.mrf.mxu1 }
 0x375   : > { %v911_v59 = vpop.f32.mrf.mxu1 }
 0x379   : > { %v623_v60 = vld [vmem:[#allocation4] sm:$0xff] }
 0x3cb   : > { %v627_v61 = vpop.permute.xlu1 %626 }
 0x3cc   : > { %v629_v62 = vmul.f32 %v627_v61, %v623_v60 }
 0x3ce   : > { %v630_v63 = vpack.c.bf16 %v629_v62, %v629_v62 }
 0x3d0   : > { %915 = vmatmul.mubr.msk.bf16.vlgmr.msra.gmra.mxu1 %vm449_vm1, %v630_v63 }
 0x490   : > { %v676_v1 = vpop.f32.mrf.mxu1 }
 0x491   : > { %v682_v2 = vadd.f32 %v676_v1, %v622_v0 }
 0x492   : > { %v916_v3 = vpop.f32.mrf.mxu1  ;;  %689 = sbr.rel (!%p685_p2) target bundleno = 1180 (0x49c), region = 60 }
 0x493   : > { %684 = vst.msk [vmem:[#allocation5] sm:$0xff] %vm683_vm6, %v682_v2 }
 0x494   : > { %v679_v4 = vpop.f32.mrf.mxu1 }
 0x496   : > { %v917_v5 = vpop.f32.mrf.mxu1 }
 0x49a   : > { %v690_v6 = vld [vmem:[#allocation5] sm:$0xff] }
 0x49b   : > { %692 = vst.msk [vmem:[%s388_s14] sm:$0xff] %vm683_vm6, %v690_v6 }
 0x49c PF: > { %s889_s7 = sshll.u32 %s1087_s25, 7  ;;  %s708_s18 = sshll.u32 %s388_s14, 4  ;;  %s709_s18 = int_to_ptr.vmem [resolvable:$true] %s708_s18 }
 0x49d   : > { %s706_s29 = scalar_lea.hbm %s1343_s6, %s889_s7  ;;  %s1361_s19 = sand.u32 1, %s1075_s22  }
 0x49e   : > { %s694_s8 = scalar_lea.sflag [#allocation7], %s1361_s19  ;;  %s1007_s11 = scalar_lea.vmem %s709_s18, 128 }
 0x49f   : > { %p1008_p4 = scmp.ne.s32.totalorder %s709_s18, %s1007_s11  ;;  %s1106_s12 = smov [#allocation6]  }
 0x4a0   : > { %s1011_s23 = sshll.u32 %s1106_s12, 4  ;;  %s1012_s23 = int_to_ptr.vmem [resolvable:$false] %s1011_s23 }
 0x4a1   : > { %p1009_p5 = pnand %p1008_p4, %p1191_p3  ;;  %s1013_s26 = scalar_lea.vmem %s1012_s23, 256 }
 0x4a2   : > { %p1014_p7 = scmp.lt.s32.totalorder %s709_s18, %s1012_s23  ;;  %p1015_p8 = scmp.lt.s32.totalorder %s1013_s26, %s1007_s11 }
 0x4a3   : > { %p1010_p6 = pneg %p1009_p5 }
 0x4a4   : > { %p1016_p10 = por %p1015_p8, %p1014_p7 }
 0x4a6   : > { %p1017_p11 = pnand %p1016_p10, %p1010_p6 }
 0x4a8   : > { %1020 = shalt.err (!%p1017_p11)
}
 0x4a9   : > { %s1021_s25 = scalar_lea.hbm %s706_s29, 128  ;;  %s1025_s27 = scalar_lea.hbm %s1343_s6, 256 }
 0x4aa   : > { %p1022_p12 = scmp.ne.s32.totalorder %s706_s29, %s1021_s25  ;;  %p1026_p1 = scmp.lt.s32.totalorder %s706_s29, %s1343_s6 }
 0x4ab   : > { %p1027_p2 = scmp.lt.s32.totalorder %s1025_s27, %s1021_s25 }
 0x4ac   : > { %p1023_p13 = pnand %p1022_p12, %p1191_p3 }
 0x4ad   : > { %p1028_p4 = por %p1027_p2, %p1026_p1 }
 0x4ae   : > { %p1024_p0 = pneg %p1023_p13 }
 0x4b0   : > { %p1029_p5 = pnand %p1028_p4, %p1024_p0 }
 0x4b2   : > { %1032 = shalt.err (!%p1029_p5)
}
 0x4b3   : > { %918 = dma.vmem_to_hbm [thread:$0]  (%p1191_p3), %s709_s18, 128, %s706_s29, %s694_s8  }
 0x4b4 PF: > { %p924_p6 = scmp.ge.s32.totalorder %s1099_s28, 2  ;;  %s720_s17 = sand.u32 1, %s1071_s21  }
 0x4b5   : > { %s721_s20 = scalar_lea.sflag [#allocation7], %s720_s17 }
 0x4b6   : > { %p921_p7 = pnand %p924_p6, %p1201_p9 }
 0x4b8   : > { %p922_p8 = pneg %p921_p7 }
 0x4ba   : > { %1066 = dma.done.wait (%p922_p8), %s721_s20, 128  }
 0x4bb   : > { %1068 = vsyncadd (%p922_p8), %s721_s20, 4294967168  ;;  %s19_s28 = sadd.s32 1, %s1099_s28   ;;  %s1363_s7 = sld [smem:[#allocation9_spill]] }
 0x4bc   : > { %p16_p10 = scmp.ge.s32.totalorder %s19_s28, 10   ;;  %s1364_s23 = sld [smem:[#allocation15_spill]] }
 0x4bd   : > { %s1365_s24 = sld [smem:[#allocation10_spill]]  ;;  %s1369_s21 = smov %s1075_s22 }
 0x4be   : > { %s1366_s25 = sld [smem:[#allocation11_spill]]  ;;  %18 = sbr.rel (!%p16_p10) target bundleno = 5 (0x5), region = 110 }
 0x4bf   : > { %s1367_s26 = sld [smem:[#allocation12_spill]] }
 0x4c0   : > { %s1368_s27 = sld [smem:[#allocation13_spill]] }
 0x4c1   : > { %s1370_s22 = smov %s1363_s7 }
 0x4c3   :  { %726 = vsyncpa [#allocation7], 1 }
 0x4c4   :  { %728 = vsyncpa [#allocation7 + $0x1], 1 }

</bundles_post_ra>
